<compile_context>
chip_gen: v7x
topology: tpu7x:2x2x1
jax: 0.10.0
libtpu: 0.0.40
codegen_flags: <defaults>
</compile_context>

<pallas_src>
import functools

import jax
import jax.numpy as jnp
from jax.experimental import pallas as pl
from jax.experimental.pallas import tpu as pltpu


def _round_up(x: int, m: int) -> int:
    return ((x + m - 1) // m) * m


def _pick_strip(tm: int) -> int:
    """Largest convenient row-strip size that divides tm."""
    if tm <= 512:
        return tm
    for cand in (512, 256, 128, 64, 32, 16, 8):
        if tm % cand == 0:
            return cand
    return tm


def _log_l1_kernel(p_ref, t_ref, out_ref, acc_ref, *,
                   total_rows, inner, strip, inv_n, need_mask):
    """Accumulate sum(|log(p/t)|) over row blocks of one slice."""
    c = pl.program_id(0)          # slice (parallel axis)
    i = pl.program_id(1)          # row-block within slice (reduction axis)
    tm = p_ref.shape[0]
    nstrips = tm // strip         # static

    @pl.when(i == 0)
    def _init():
        acc_ref[...] = jnp.zeros_like(acc_ref)

    row0 = (c * inner + i) * tm   # logical first row of this block

    def strip_sum(r):
        p = p_ref[pl.ds(r, strip), :].astype(jnp.float32)
        t = t_ref[pl.ds(r, strip), :].astype(jnp.float32)
        if need_mask:
            rid = row0 + r + jax.lax.broadcasted_iota(jnp.int32, (strip, 1), 0)
            valid = rid < total_rows
            # Masked rows -> p=t=1 -> log(1/1)=0: zero contribution.
            p = jnp.where(valid, p, 1.0)
            t = jnp.where(valid, t, 1.0)
        d = jnp.abs(jnp.log(p / t))                 # exact divide + one log
        return jnp.sum(d, axis=0, keepdims=True)    # (1, lanes), XLU reduce

    if nstrips == 1:
        acc_ref[...] += strip_sum(0)
    else:
        def body(s, carry):
            r = pl.multiple_of(s * strip, strip)
            acc_ref[...] += strip_sum(r)
            return carry
        jax.lax.fori_loop(0, nstrips, body, 0, unroll=(nstrips <= 8))

    @pl.when(i == pl.num_programs(1) - 1)
    def _finalize():
        # Single cross-lane reduce + mean scaling, once per slice.
        out_ref[...] = (jnp.sum(acc_ref[...], keepdims=True)
                        * inv_n).astype(out_ref.dtype)


def log_stft_magnitude(predicts_mag: jax.Array, targets_mag: jax.Array, *,
                       target_rows: int = 2048, num_slices: int = 2) -> jax.Array:
    """Scalar mean(|log(predicts_mag) - log(targets_mag)|) via a Pallas kernel."""
    assert predicts_mag.shape == targets_mag.shape
    n = int(predicts_mag.size)
    in_dtype = predicts_mag.dtype
    itemsize = jnp.dtype(in_dtype).itemsize
    sub = {4: 8, 2: 16, 1: 32}.get(itemsize, 8)          # dtype-aware sublanes
    target_rows = max(sub, (int(target_rows) // sub) * sub)

    # Lane width: prefer a lane-dense power-of-two divisor of n (free reshape of
    # the contiguous buffer); otherwise the trailing dim (full-dim last block is
    # always legal).  Never pads / copies in HBM.
    lanes = None
    for cand in (512, 256, 128):
        if n % cand == 0:
            lanes = cand
            break
    if lanes is None:
        lanes = int(predicts_mag.shape[-1]) if predicts_mag.ndim >= 2 else n
    rows = n // lanes
    lanes_pad = _round_up(lanes, 128)

    p2 = predicts_mag.reshape(rows, lanes)
    t2 = targets_mag.reshape(rows, lanes)

    # Row tile: cap each input block at ~8 MiB of VMEM.
    cap = (8 << 20) // (lanes_pad * itemsize)
    if cap >= 256:
        cap = (cap // 256) * 256
    else:
        cap = max(sub, (cap // sub) * sub)
    tm_max = max(sub, min(target_rows, cap))
    tm = rows if rows <= tm_max else tm_max

    nb = -(-rows // tm)                                   # number of row blocks
    num_slices = max(1, min(int(num_slices), nb))
    inner = -(-nb // num_slices)
    need_mask = (nb * tm != rows) or (num_slices * inner != nb)

    strip = _pick_strip(tm)

    # VMEM budget: 2 inputs x 2 pipeline buffers x block + strip temporaries +
    # headroom; clamp to <= 48 MiB (safe on v7x's 64 MiB/TC, trivially on
    # v5e/v6e's 128 MiB).
    block_bytes = tm * lanes_pad * itemsize
    temp_bytes = 8 * strip * lanes_pad * 4
    vmem_bytes = int(min(48 << 20,
                         max(16 << 20, 4 * block_bytes + temp_bytes + (4 << 20))))

    kernel = functools.partial(
        _log_l1_kernel, total_rows=rows, inner=inner, strip=strip,
        inv_n=1.0 / n, need_mask=need_mask)

    def row_block(c, i):
        # Clamp so out-of-range logical blocks (masked to zero in-kernel) still
        # map to an in-bounds DMA window.
        return (jnp.minimum(c * inner + i, nb - 1), 0)

    partials = pl.pallas_call(
        kernel,
        out_shape=jax.ShapeDtypeStruct((num_slices, 1), jnp.float32),
        grid_spec=pltpu.PrefetchScalarGridSpec(
            num_scalar_prefetch=0,
            grid=(num_slices, inner),
            in_specs=[
                pl.BlockSpec((tm, lanes), row_block),
                pl.BlockSpec((tm, lanes), row_block),
            ],
            out_specs=pl.BlockSpec((1, 1), lambda c, i: (c, 0)),
            scratch_shapes=[
                pltpu.VMEM((1, lanes), jnp.float32),      # lane-parallel partial sums
            ],
        ),
        compiler_params=pltpu.CompilerParams(
            dimension_semantics=("parallel", "arbitrary"),
            vmem_limit_bytes=vmem_bytes,
        ),
    )(p2, t2)

    # Each slice's partial already carries the 1/N factor; sum of slices = mean.
    return jnp.sum(partials)


if __name__ == "__main__":
    key = jax.random.PRNGKey(0)
    k1, k2, k3, k4 = jax.random.split(key, 4)

    # Magnitude-spectrogram-like shape: [batch=2, frames=16, freq=64].
    B, T, F = 2, 16, 64
    predicts_mag = jax.random.uniform(k1, (B, T, F), dtype=jnp.float32,
                                      minval=0.1, maxval=2.0)
    targets_mag = jax.random.uniform(k2, (B, T, F), dtype=jnp.float32,
                                     minval=0.1, maxval=2.0)
    result = jax.block_until_ready(log_stft_magnitude(predicts_mag, targets_mag))
    ref = jnp.mean(jnp.abs(jnp.log(predicts_mag) - jnp.log(targets_mag)))
    assert jnp.allclose(result, ref, rtol=1e-5, atol=1e-6), (result, ref)

    # Ragged shape exercising the full-last-dim (non-128-multiple) lane path.
    B2, T2, F2 = 2, 7, 65
    p_r = jax.random.uniform(k3, (B2, T2, F2), dtype=jnp.float32,
                             minval=0.1, maxval=2.0)
    t_r = jax.random.uniform(k4, (B2, T2, F2), dtype=jnp.float32,
                             minval=0.1, maxval=2.0)
    result_r = jax.block_until_ready(log_stft_magnitude(p_r, t_r))
    ref_r = jnp.mean(jnp.abs(jnp.log(p_r) - jnp.log(t_r)))
    assert jnp.allclose(result_r, ref_r, rtol=1e-5, atol=1e-6), (result_r, ref_r)

    print("KERNEL_OK")
</pallas_src>

<mosaic_0001>
module attributes {stable_mosaic.version = 11 : i64} {
  func.func @_log_l1_kernel(%arg0: i32, %arg1: i32, %arg2: memref<4x512xf32, #tpu.memory_space<vmem>>, %arg3: memref<4x512xf32, #tpu.memory_space<vmem>>, %arg4: memref<1x1xf32, #tpu.memory_space<vmem>>, %arg5: memref<1x512xf32, #tpu.memory_space<vmem>>) attributes {dimension_semantics = [#tpu.dimension_semantics<parallel>, #tpu.dimension_semantics<arbitrary>], iteration_bounds = array<i64: 1, 1>, scalar_prefetch = 0 : i64, scratch_operands = 1 : i64, tpu.core_type = #tpu.core_type<tc>, window_params = [{transform_indices = @transform_0, window_bounds = array<i64: 4, 512>}, {transform_indices = @transform_1, window_bounds = array<i64: 4, 512>}, {transform_indices = @transform_2, window_bounds = array<i64: 1, 1>}]} {
    %c0_i32 = arith.constant 0 : i32
    %0 = arith.cmpi eq, %arg1, %c0_i32 : i32
    %1 = arith.extui %0 : i1 to i32
    %c0_i32_0 = arith.constant 0 : i32
    %2 = arith.cmpi ne, %1, %c0_i32_0 : i32
    scf.if %2 {
      %cst_10 = arith.constant 0.000000e+00 : f32
      %16 = vector.broadcast %cst_10 : f32 to vector<1x512xf32>
      %c0_11 = arith.constant 0 : index
      %c0_12 = arith.constant 0 : index
      %17 = vector.load %arg5[%c0_11, %c0_12] : memref<1x512xf32, #tpu.memory_space<vmem>>, vector<1x512xf32>
      tpu.vector_store %arg5[%c0_11, %c0_12], %16 {strides = array<i32>} : memref<1x512xf32, #tpu.memory_space<vmem>>, vector<1x512xf32>,
    } else {
    }
    %c0 = arith.constant 0 : index
    %c0_1 = arith.constant 0 : index
    %3 = vector.load %arg5[%c0, %c0_1] : memref<1x512xf32, #tpu.memory_space<vmem>>, vector<1x512xf32>
    %c0_2 = arith.constant 0 : index
    %c0_3 = arith.constant 0 : index
    %4 = vector.load %arg2[%c0_2, %c0_3] : memref<4x512xf32, #tpu.memory_space<vmem>>, vector<4x512xf32>
    %c0_4 = arith.constant 0 : index
    %c0_5 = arith.constant 0 : index
    %5 = vector.load %arg3[%c0_4, %c0_5] : memref<4x512xf32, #tpu.memory_space<vmem>>, vector<4x512xf32>
    %6 = arith.divf %4, %5 : vector<4x512xf32>
    %7 = math.log %6 : vector<4x512xf32>
    %8 = math.absf %7 : vector<4x512xf32>
    %cst = arith.constant dense<0.000000e+00> : vector<512xf32>
    %9 = vector.multi_reduction <add>, %8, %cst [0] : vector<4x512xf32> to vector<512xf32>
    %10 = vector.shape_cast %9 : vector<512xf32> to vector<1x512xf32>
    %11 = arith.addf %3, %10 : vector<1x512xf32>
    %c0_6 = arith.constant 0 : index
    %c0_7 = arith.constant 0 : index
    %12 = vector.load %arg5[%c0_6, %c0_7] : memref<1x512xf32, #tpu.memory_space<vmem>>, vector<1x512xf32>
    tpu.vector_store %arg5[%c0_6, %c0_7], %11 {strides = array<i32>} : memref<1x512xf32, #tpu.memory_space<vmem>>, vector<1x512xf32>,
    %c0_i32_8 = arith.constant 0 : i32
    %13 = arith.cmpi eq, %arg1, %c0_i32_8 : i32
    %14 = arith.extui %13 : i1 to i32
    %c0_i32_9 = arith.constant 0 : i32
    %15 = arith.cmpi ne, %14, %c0_i32_9 : i32
    scf.if %15 {
      %c0_10 = arith.constant 0 : index
      %c0_11 = arith.constant 0 : index
      %16 = vector.load %arg5[%c0_10, %c0_11] : memref<1x512xf32, #tpu.memory_space<vmem>>, vector<1x512xf32>
      %17 = vector.shape_cast %16 : vector<1x512xf32> to vector<1x1x512xf32>
      %cst_12 = arith.constant dense<0.000000e+00> : vector<1xf32>
      %18 = vector.multi_reduction <add>, %17, %cst_12 [1, 2] : vector<1x1x512xf32> to vector<1xf32>
      %19 = vector.shape_cast %18 : vector<1xf32> to vector<1x1x1xf32>
      %20 = vector.extract %19[0, 0, 0] : f32 from vector<1x1x1xf32>
      %21 = vector.broadcast %20 : f32 to vector<1x1xf32>
      %cst_13 = arith.constant 4.8828125E-4 : f32
      %22 = vector.broadcast %cst_13 : f32 to vector<1x1xf32>
      %23 = arith.mulf %21, %22 : vector<1x1xf32>
      %c0_14 = arith.constant 0 : index
      %c0_15 = arith.constant 0 : index
      %24 = vector.load %arg4[%c0_14, %c0_15] : memref<1x1xf32, #tpu.memory_space<vmem>>, vector<1x1xf32>
      tpu.vector_store %arg4[%c0_14, %c0_15], %23 {strides = array<i32>} : memref<1x1xf32, #tpu.memory_space<vmem>>, vector<1x1xf32>,
    } else {
    }
    return
  }
  func.func @transform_0(%arg0: i32, %arg1: i32) -> (i32, i32) {
    %c1_i32 = arith.constant 1 : i32
    %0 = arith.muli %arg0, %c1_i32 : i32
    %1 = arith.addi %0, %arg1 : i32
    %c0_i32 = arith.constant 0 : i32
    %2 = arith.minsi %1, %c0_i32 : i32
    %c0_i32_0 = arith.constant 0 : i32
    %c0_i32_1 = arith.constant 0 : i32
    return %2, %c0_i32_0 : i32, i32
  }
  func.func @transform_1(%arg0: i32, %arg1: i32) -> (i32, i32) {
    %c1_i32 = arith.constant 1 : i32
    %0 = arith.muli %arg0, %c1_i32 : i32
    %1 = arith.addi %0, %arg1 : i32
    %c0_i32 = arith.constant 0 : i32
    %2 = arith.minsi %1, %c0_i32 : i32
    %c0_i32_0 = arith.constant 0 : i32
    %c0_i32_1 = arith.constant 0 : i32
    return %2, %c0_i32_0 : i32, i32
  }
  func.func @transform_2(%arg0: i32, %arg1: i32) -> (i32, i32) {
    %c0_i32 = arith.constant 0 : i32
    %c0_i32_0 = arith.constant 0 : i32
    return %arg0, %c0_i32 : i32, i32
  }
}

</mosaic_0001>

<bundles_post_ra>
// kernel: tpu_custom_call.1
= control target key start
LH: loop header
LB: loop body
LE: loop exit
PB: predicated region body
PF: predicated region fallthrough
CT: control target
= control target key end

     0   :  { %7 = vsyncpa [#allocation4], 0  ;;  %s365_s0 = inlined_call_operand.hbm [shape: f32[4,512], index: 0, kind: input, shape index: {}]   ;;  %s366_s1 = inlined_call_operand.hbm [shape: f32[4,512], index: 1, kind: input, shape index: {}]   ;;  %s367_s2 = inlined_call_operand.hbm [shape: f32[1,1], index: 2, kind: output, shape index: {}]  }
   0x1   :  { %8 = vsyncpa [#allocation7], 0 }
   0x2   :  { %9 = vsyncpa [#allocation5], 0  ;;  %s301_s9 = smov [#allocation3]   ;;  %s302_s11 = smov [#allocation6]  }
   0x3   :  { %s22_s10 = sshll.u32 %s301_s9, 4  ;;  %s38_s12 = sshll.u32 %s302_s11, 4  ;;  %s23_s10 = int_to_ptr.vmem [resolvable:$true] %s22_s10  ;;  %s39_s12 = int_to_ptr.vmem [resolvable:$true] %s38_s12 }
   0x4   :  { %s229_s15 = scalar_lea.hbm %s365_s0, 256 }
   0x5   :  { %p230_p0 = scmp.ne.s32.totalorder %s365_s0, %s229_s15  ;;  %p233_p1 = scmp.lt.u32.totalorder %s229_s15, %s365_s0 }
   0x7   :  { %p235_p2 = pnand %p233_p1, %p230_p0 }
   0x9   :  { %238 = shalt.err (!%p235_p2)
}
   0xa   :  { %s239_s20 = scalar_lea.vmem %s23_s10, 256  ;;  %p244_p4 = scmp.lt.s32.totalorder %s23_s10, %s23_s10 }
   0xb   :  { %p240_p3 = scmp.ne.s32.totalorder %s23_s10, %s239_s20  ;;  %p245_p5 = scmp.lt.s32.totalorder %s239_s20, %s239_s20 }
   0xd   :  { %p246_p6 = por %p245_p5, %p244_p4 }
   0xf   :  { %p247_p7 = pnand %p246_p6, %p240_p3 }
  0x11   :  { %250 = shalt.err (!%p247_p7)
}
  0x12   :  { %25 = dma.hbm_to_vmem [thread:$0]  %s365_s0, 256, %s23_s10, [#allocation4]  }
  0x13   :  { %s251_s25 = scalar_lea.hbm %s366_s1, 256 }
  0x14   :  { %p252_p8 = scmp.ne.s32.totalorder %s366_s1, %s251_s25  ;;  %p255_p9 = scmp.lt.u32.totalorder %s251_s25, %s366_s1 }
  0x16   :  { %p257_p10 = pnand %p255_p9, %p252_p8 }
  0x18   :  { %260 = shalt.err (!%p257_p10)
}
  0x19   :  { %s261_s30 = scalar_lea.vmem %s39_s12, 256  ;;  %p266_p12 = scmp.lt.s32.totalorder %s39_s12, %s39_s12 }
  0x1a   :  { %p262_p11 = scmp.ne.s32.totalorder %s39_s12, %s261_s30  ;;  %p267_p13 = scmp.lt.s32.totalorder %s261_s30, %s261_s30 }
  0x1c   :  { %p268_p0 = por %p267_p13, %p266_p12 }
  0x1e   :  { %p269_p1 = pnand %p268_p0, %p262_p11 }
  0x20   :  { %272 = shalt.err (!%p269_p1)
}
  0x21   :  { %41 = dma.hbm_to_vmem [thread:$0]  %s366_s1, 256, %s39_s12, [#allocation7]  }
  0x22   :  { %295 = dma.done.wait [#allocation4], 256  }
  0x23   :  { %296 = vsyncadd [#allocation4], 4294967040 }
  0x24   :  { %297 = dma.done.wait [#allocation7], 256  }
  0x25   :  { %298 = vsyncadd [#allocation7], 4294967040  ;;  %v58_v0 = vlaneseq  ;;  %v303_v2 = vmov 0.0   ;;  %v66_v3 = vld [vmem:[#allocation6] sm:$0xff]  ;;  %v67_v4 = vld [vmem:[#allocation6 + $0x8] sm:$0xff]  ;;  %vm84_vm1 = vcmask 1043456  }
  0x26   :  { %221 = vrcp.f32 %v66_v3  ;;  %v64_v5 = vld [vmem:[#allocation3] sm:$0xff]  ;;  %v65_v6 = vld [vmem:[#allocation3 + $0x8] sm:$0xff]  ;;  %v304_v31 = vmov 1966171168   ;;  %vm173_vm2 = vcmask 1040384   ;;  %s305_s1 = smov [#allocation8]  }
  0x27   :  { %vm345_vm0 = vcmp.lt.s32.totalorder %v58_v0, 512  ;;  %223 = vrcp.f32 %v67_v4  ;;  %v120_v32 = vunpack.c.l.s4 %v304_v31  ;;  %v123_v42 = vshrl.u32 %v58_v0, 7  ;;  %s200_s4 = sshll.u32 %s305_s1, 4  ;;  %s201_s4 = int_to_ptr.vmem [resolvable:$true] %s200_s4 }
  0x28   :  { %62 = vst.msk [vmem:[#allocation2] sm:$0xf] %vm345_vm0, %v303_v2  ;;  %vm192_vm3 = vcmask 0   ;;  %s273_s6 = scalar_lea.vmem %s201_s4, 16  ;;  %s277_s7 = scalar_lea.vmem %s201_s4, 32 }
  0x29   :  { %v121_v41 = vunpack.c.0.s8 %v120_v32  ;;  %v155_v60 = vsub.s32 0, %v123_v42  ;;  %v159_v61 = vsub.s32 1, %v123_v42  ;;  %v163_v62 = vsub.s32 2, %v123_v42  ;;  %p274_p2 = scmp.ne.s32.totalorder %s201_s4, %s273_s6  ;;  %p278_p3 = scmp.lt.s32.totalorder %s201_s4, %s201_s4 }
  0x2a   :  { %v167_v63 = vsub.s32 3, %v123_v42  ;;  %p279_p4 = scmp.lt.s32.totalorder %s277_s7, %s273_s6 }
  0x2b   :  { %v124_v50 = vsub.s32 %v121_v41, %v123_v42 }
  0x2c   :  { %p280_p5 = por %p279_p4, %p278_p3 }
  0x2e   :  { %p281_p6 = pnand %p280_p5, %p274_p2 }
  0x2f   :  { %v63_v57 = vld [vmem:[#allocation2] sm:$0xf] }
  0x30   :  { %v222_v7 = vpop.eup %221 }
  0x31   :  { %v224_v8 = vpop.eup %223  ;;  %v69_v9 = vmul.f32 %v222_v7, %v64_v5 }
  0x32   :  { %v71_v10 = vmul.f32 %v224_v8, %v65_v6 }
  0x33   :  { %225 = vlog2.f32 %v69_v9 }
  0x34   :  { %227 = vlog2.f32 %v71_v10 }
  0x3d   :  { %v226_v11 = vpop.eup %225 }
  0x3e   :  { %v228_v12 = vpop.eup %227  ;;  %v73_v13 = vmul.f32 0.6931472, %v226_v11 }
  0x3f   :  { %v75_v14 = vmul.f32 0.6931472, %v228_v12 }
  0x40   :  { %v76_v15 = vand.u32 2147483647, %v73_v13 }
  0x41   :  { %v77_v16 = vand.u32 2147483647, %v75_v14 }
  0x42   :  { %v80_v17 = vcombine.high %v76_v15, %v76_v15  ;;  %v85_v18 = vsel %vm84_vm1, %v76_v15, 0.0 }
  0x43   :  { %v81_v19 = vcombine.high %v77_v16, %v77_v16  ;;  %v86_v20 = vrot.slane %v85_v18, 4  ;;  %v99_v21 = vsel %vm84_vm1, %v77_v16, 0.0 }
  0x44   :  { %v92_v22 = vsel %vm84_vm1, %v80_v17, 0.0  ;;  %v100_v23 = vrot.slane %v99_v21, 4 }
  0x45   :  { %v87_v24 = vadd.f32 %v86_v20, %v85_v18  ;;  %v93_v25 = vrot.slane %v92_v22, 4  ;;  %v106_v26 = vsel %vm84_vm1, %v81_v19, 0.0 }
  0x46   :  { %v101_v27 = vadd.f32 %v100_v23, %v99_v21  ;;  %v107_v28 = vrot.slane %v106_v26, 4 }
  0x47   :  { %v88_v29 = vrot.slane %v87_v24, 2  ;;  %v94_v30 = vadd.f32 %v93_v25, %v92_v22 }
  0x48   :  { %v102_v33 = vrot.slane %v101_v27, 2  ;;  %v108_v34 = vadd.f32 %v107_v28, %v106_v26 }
  0x49   :  { %v89_v35 = vadd.f32 %v88_v29, %v87_v24  ;;  %v95_v36 = vrot.slane %v94_v30, 2 }
  0x4a   :  { %v103_v37 = vadd.f32 %v102_v33, %v101_v27  ;;  %v109_v38 = vrot.slane %v108_v34, 2 }
  0x4b   :  { %v90_v39 = vrot.slane %v89_v35, 1  ;;  %v96_v40 = vadd.f32 %v95_v36, %v94_v30 }
  0x4c   :  { %v104_v43 = vrot.slane %v103_v37, 1  ;;  %v110_v44 = vadd.f32 %v109_v38, %v108_v34 }
  0x4d   :  { %v91_v45 = vadd.f32 %v90_v39, %v89_v35  ;;  %v97_v46 = vrot.slane %v96_v40, 1 }
  0x4e   :  { %v105_v47 = vadd.f32 %v104_v43, %v103_v37  ;;  %v111_v48 = vrot.slane %v110_v44, 1 }
  0x4f   :  { %v98_v49 = vadd.f32 %v97_v46, %v96_v40 }
  0x50   :  { %v112_v51 = vadd.f32 %v111_v48, %v110_v44 }
  0x51   :  { %v117_v52 = vcombine.low %v91_v45, %v98_v49 }
  0x52   :  { %v118_v53 = vcombine.low %v105_v47, %v112_v51 }
  0x53   :  { %v125_v54 = vrot.slane %v117_v52, %v124_v50 }
  0x54   :  { %v132_v55 = vrot.slane %v118_v53, %v124_v50 }
  0x56   :  { %v133_v56 = vcombine.low %v125_v54, %v132_v55 }
  0x58   :  { %v140_v58 = vrot.slane %v133_v56, %v124_v50 }
  0x5a   :  { %v142_v59 = vadd.f32 %v140_v58, %v63_v57 }
  0x5c   :  { %147 = vst.msk [vmem:[#allocation2] sm:$0xf] %vm345_vm0, %v142_v59 }
  0x63   :  { %v151_v0 = vld [vmem:[#allocation2] sm:$0xf] }
  0x64   :  { %v156_v2 = vrot.slane %v151_v0, %v155_v60  ;;  %v160_v3 = vrot.slane %v151_v0, %v159_v61  ;;  %v164_v4 = vrot.slane %v151_v0, %v163_v62  ;;  %v168_v5 = vrot.slane %v151_v0, %v167_v63 }
  0x66   :  { %v174_v6 = vsel %vm173_vm2, %v156_v2, 0.0  ;;  %v175_v7 = vsel %vm173_vm2, %v160_v3, 0.0  ;;  %v177_v8 = vsel %vm173_vm2, %v164_v4, 0.0  ;;  %v179_v10 = vsel %vm173_vm2, %v168_v5, 0.0 }
  0x67   :  { %v176_v9 = vadd.f32 %v175_v7, %v174_v6 }
  0x69   :  { %v178_v11 = vadd.f32 %v177_v8, %v176_v9 }
  0x6b   :  { %v180_v12 = vadd.f32 %v179_v10, %v178_v11 }
  0x6d   :  { %181 = vadd.xlane.f32.xlu0 %v180_v12 }
  0xfa   :  { %v182_v1 = vpop.xlane.xlu0 %181 }
  0xfb   :  { %v183_v13 = vrot.slane %v182_v1, 4 }
  0xfd   :  { %v184_v14 = vadd.f32 %v183_v13, %v182_v1 }
  0xff   :  { %v185_v15 = vrot.slane %v184_v14, 2 }
 0x101   :  { %v186_v16 = vadd.f32 %v185_v15, %v184_v14 }
 0x103   :  { %v187_v17 = vrot.slane %v186_v16, 1 }
 0x105   :  { %v188_v18 = vadd.f32 %v187_v17, %v186_v16 }
 0x107   :  { %214 = vpush %v188_v18 }
 0x138   :  { %s215_s5 = spop %214 }
 0x139   :  { %v190_v19 = vstv %s215_s5 }
 0x13a   :  { %v191_v20 = vmul.f32 0.00048828125, %v190_v19 }
 0x13c   :  { %193 = vst.msk [vmem:[#allocation8] sm:$0x1] %vm192_vm3, %v191_v20 }
 0x13d   :  { %284 = shalt.err (!%p281_p6)
}
 0x13e   :  { %s285_s10 = scalar_lea.hbm %s367_s2, 16 }
 0x13f   :  { %p286_p7 = scmp.ne.s32.totalorder %s367_s2, %s285_s10  ;;  %p289_p8 = scmp.lt.u32.totalorder %s285_s10, %s367_s2 }
 0x141   :  { %p291_p9 = pnand %p289_p8, %p286_p7 }
 0x143   :  { %294 = shalt.err (!%p291_p9)
}
 0x144   :  { %203 = dma.vmem_to_hbm [thread:$0]  %s201_s4, 16, %s367_s2, [#allocation5]  }
 0x145   :  { %299 = dma.done.wait [#allocation5], 16  }
 0x146   :  { %300 = vsyncadd [#allocation5], 4294967280 }
 0x147   :  { %207 = vsyncpa [#allocation4], 1 }
 0x148   :  { %208 = vsyncpa [#allocation7], 1 }
 0x149   :  { %209 = vsyncpa [#allocation5], 1 }

</bundles_post_ra>
